<compile_context>
chip_gen: v6e
topology: v6e:2x2x1
jax: 0.10.0
libtpu: 0.0.40
codegen_flags: <defaults>
</compile_context>

<pallas_src>
import math

import jax
import jax.numpy as jnp
from jax.experimental import pallas as pl
from jax.experimental.pallas import tpu as pltpu

# ----------------------------- configuration --------------------------------
NUM_CLASSES = 4          # len(categories)
B = 2                    # batch
S = 8                    # sequence length
BS = B * S               # flattened rows
E = 32                   # hidden / embedding size
H = 2                    # attention heads
DH = E // H              # head dim
FFN = 64                 # feed-forward inner size
VOCAB = 100
LN_EPS = 1e-5
LOGITS_PAD = 128         # lane-dense logits output width (sliced to NUM_CLASSES outside)


# --------------------- Pallas kernel: fused forward pass ---------------------
def fused_forward_kernel(ids_ref, mask_ref, tok_emb_ref, pos_emb_ref,
                         wq_ref, bq_ref, wk_ref, bk_ref, wv_ref, bv_ref,
                         wo_ref, bo_ref, g1_ref, be1_ref,
                         w1_ref, b1_ref, w2_ref, b2_ref, g2_ref, be2_ref,
                         cw1_ref, cb1_ref, cw2_ref, cb2_ref,
                         logits_ref):
    f32 = jnp.float32

    # ---- token + position embedding lookup (one-hot matmul, no gather) ----
    ids = ids_ref[...]                                                # (BS, 1) int32
    vocab_iota = jax.lax.broadcasted_iota(jnp.int32, (BS, VOCAB), 1)  # (BS, VOCAB)
    onehot = (vocab_iota == ids).astype(f32)                          # (BS, VOCAB)
    pos = jnp.concatenate([pos_emb_ref[...]] * B, axis=0)             # (BS, E)
    x = jnp.dot(onehot, tok_emb_ref[...], preferred_element_type=f32) + pos   # (BS, E)

    def ln(v, g, b):
        mu = jnp.mean(v, axis=-1, keepdims=True)
        var = jnp.mean((v - mu) ** 2, axis=-1, keepdims=True)
        return (v - mu) * jax.lax.rsqrt(var + LN_EPS) * g + b

    # ---- additive key-padding mask bias, computed in-kernel ----
    m = mask_ref[...].astype(f32)                                     # (B, S)
    key_bias = [(1.0 - m[b:b + 1, :]) * -1e9 for b in range(B)]       # each (1, S)

    # ---- multi-head self-attention (per-head weights: no lane slicing / concat) ----
    scale = 1.0 / math.sqrt(DH)
    attn = jnp.zeros((BS, E), f32)
    for h in range(H):                                                # static unroll
        qh = jnp.dot(x, wq_ref[h], preferred_element_type=f32) + bq_ref[h]   # (BS, DH)
        kh = jnp.dot(x, wk_ref[h], preferred_element_type=f32) + bk_ref[h]   # (BS, DH)
        vh = jnp.dot(x, wv_ref[h], preferred_element_type=f32) + bv_ref[h]   # (BS, DH)
        ctx_rows = []
        for b in range(B):                                            # static unroll
            rs = slice(b * S, (b + 1) * S)                            # 8-aligned sublane slice
            s = jax.lax.dot_general(qh[rs], kh[rs], (((1,), (1,)), ((), ())),
                                    preferred_element_type=f32) * scale      # (S, S)
            s = s + key_bias[b]
            s = s - jnp.max(s, axis=-1, keepdims=True)
            p = jnp.exp(s)
            p = p * pl.reciprocal(jnp.sum(p, axis=-1, keepdims=True), approx=True)
            ctx_rows.append(jnp.dot(p, vh[rs], preferred_element_type=f32))  # (S, DH)
        ctx_h = jnp.concatenate(ctx_rows, axis=0)                     # (BS, DH) sublane concat
        attn = attn + jnp.dot(ctx_h, wo_ref[h], preferred_element_type=f32)  # (BS, E)
    attn = attn + bo_ref[...]

    h1 = ln(x + attn, g1_ref[...], be1_ref[...])

    # ---- feed-forward ----
    f = jnp.maximum(
        jnp.dot(h1, w1_ref[...], preferred_element_type=f32) + b1_ref[...], 0.0)
    f = jnp.dot(f, w2_ref[...], preferred_element_type=f32) + b2_ref[...]
    out = ln(h1 + f, g2_ref[...], be2_ref[...])                       # (BS, E)

    # ---- classifier head on CLS rows (row b*S of each batch element) ----
    cls = jnp.concatenate([out[b * S:b * S + 1, :] for b in range(B)], axis=0)  # (B, E)
    ch = jnp.maximum(
        jnp.dot(cls, cw1_ref[...], preferred_element_type=f32) + cb1_ref[...], 0.0)
    # TODO(synk): Dropout(0.4) -> identity at inference.
    logits = jnp.dot(ch, cw2_ref[...], preferred_element_type=f32) + cb2_ref[...]  # (B, 128)
    logits_ref[...] = logits.astype(logits_ref.dtype)


# ------------------------------- full forward --------------------------------
def text_classifier_forward(token_ids, attention_mask, params):
    ids2d = token_ids.reshape(BS, 1).astype(jnp.int32)
    mask = attention_mask.reshape(B, S).astype(jnp.int32)

    args = (ids2d, mask, params["tok_emb"], params["pos_emb"],
            *params["encoder"],
            params["cls_w1"], params["cls_b1"], params["cls_w2"], params["cls_b2"])

    logits_padded = pl.pallas_call(
        fused_forward_kernel,
        out_shape=jax.ShapeDtypeStruct((B, LOGITS_PAD), jnp.float32),
        compiler_params=pltpu.CompilerParams(vmem_limit_bytes=32 * 1024 * 1024),
    )(*args)

    return logits_padded[:, :NUM_CLASSES]


# --------------------------- deterministic params ----------------------------
def make_params(key):
    keys = jax.random.split(key, 24)
    k = iter(keys)
    n = lambda shape, scale=0.02: (scale * jax.random.normal(next(k), shape)).astype(jnp.float32)

    # Full-matrix attention weights, then split per head on the host so the kernel
    # never slices the lane axis.
    wq, wk, wv, wo = n((E, E)), n((E, E)), n((E, E)), n((E, E))
    zE = jnp.zeros((1, E), jnp.float32)

    split_w = lambda w: w.reshape(E, H, DH).transpose(1, 0, 2)        # (H, E, DH)
    split_b = lambda b: b.reshape(H, DH)[:, None, :]                  # (H, 1, DH)

    encoder = (
        split_w(wq), split_b(zE),                       # Wq, bq  per head
        split_w(wk), split_b(zE),                       # Wk, bk
        split_w(wv), split_b(zE),                       # Wv, bv
        wo.reshape(H, DH, E), zE,                       # Wo per head, bo
        jnp.ones((1, E), jnp.float32), zE,              # LN1 gamma, beta
        n((E, FFN)), jnp.zeros((1, FFN), jnp.float32),  # FFN W1, b1
        n((FFN, E)), zE,                                # FFN W2, b2
        jnp.ones((1, E), jnp.float32), zE,              # LN2 gamma, beta
    )

    # Classifier head; W2/b2 zero-padded to 128 lanes for lane-dense logits stores.
    cls_w2 = n((E, NUM_CLASSES))
    cls_w2_pad = jnp.pad(cls_w2, ((0, 0), (0, LOGITS_PAD - NUM_CLASSES)))
    cls_b2_pad = jnp.zeros((1, LOGITS_PAD), jnp.float32)

    return {
        "tok_emb": n((VOCAB, E)),
        "pos_emb": n((S, E)),
        "encoder": encoder,
        "cls_w1": n((E, E)),
        "cls_b1": jnp.zeros((1, E), jnp.float32),
        "cls_w2": cls_w2_pad,
        "cls_b2": cls_b2_pad,
    }


# ----------------------------------- main ------------------------------------
if __name__ == "__main__":
    root = jax.random.PRNGKey(0)
    k_param, k_tok = jax.random.split(root)

    params = make_params(k_param)

    token_ids = jax.random.randint(k_tok, (B, S), 0, VOCAB, dtype=jnp.int32)
    attention_mask = jnp.ones((B, S), jnp.int32)
    attention_mask = attention_mask.at[1, -2:].set(0)   # pad out last 2 tokens of sample 1

    logits = text_classifier_forward(token_ids, attention_mask, params)
    logits = jax.block_until_ready(logits)

    assert logits.shape == (B, NUM_CLASSES)
    assert bool(jnp.all(jnp.isfinite(logits)))
    print("KERNEL_OK")
</pallas_src>

<mosaic_0001>
module attributes {stable_mosaic.version = 11 : i64} {
  func.func @fused_forward_kernel(%arg0: memref<16x1xi32, #tpu.memory_space<vmem>>, %arg1: memref<2x8xi32, #tpu.memory_space<vmem>>, %arg2: memref<100x32xf32, #tpu.memory_space<vmem>>, %arg3: memref<8x32xf32, #tpu.memory_space<vmem>>, %arg4: memref<2x32x16xf32, #tpu.memory_space<vmem>>, %arg5: memref<2x1x16xf32, #tpu.memory_space<vmem>>, %arg6: memref<2x32x16xf32, #tpu.memory_space<vmem>>, %arg7: memref<2x1x16xf32, #tpu.memory_space<vmem>>, %arg8: memref<2x32x16xf32, #tpu.memory_space<vmem>>, %arg9: memref<2x1x16xf32, #tpu.memory_space<vmem>>, %arg10: memref<2x16x32xf32, #tpu.memory_space<vmem>>, %arg11: memref<1x32xf32, #tpu.memory_space<vmem>>, %arg12: memref<1x32xf32, #tpu.memory_space<vmem>>, %arg13: memref<1x32xf32, #tpu.memory_space<vmem>>, %arg14: memref<32x64xf32, #tpu.memory_space<vmem>>, %arg15: memref<1x64xf32, #tpu.memory_space<vmem>>, %arg16: memref<64x32xf32, #tpu.memory_space<vmem>>, %arg17: memref<1x32xf32, #tpu.memory_space<vmem>>, %arg18: memref<1x32xf32, #tpu.memory_space<vmem>>, %arg19: memref<1x32xf32, #tpu.memory_space<vmem>>, %arg20: memref<32x32xf32, #tpu.memory_space<vmem>>, %arg21: memref<1x32xf32, #tpu.memory_space<vmem>>, %arg22: memref<32x128xf32, #tpu.memory_space<vmem>>, %arg23: memref<1x128xf32, #tpu.memory_space<vmem>>, %arg24: memref<2x128xf32, #tpu.memory_space<vmem>>) attributes {dimension_semantics = [], scalar_prefetch = 0 : i64, scratch_operands = 0 : i64, tpu.core_type = #tpu.core_type<tc>} {
    %c0 = arith.constant 0 : index
    %c0_0 = arith.constant 0 : index
    %0 = vector.load %arg0[%c0, %c0_0] : memref<16x1xi32, #tpu.memory_space<vmem>>, vector<16x1xi32>
    %1 = tpu.iota {dimensions = array<i32: 1>} : vector<16x100xi32>
    %2 = vector.broadcast %0 : vector<16x1xi32> to vector<16x100xi32>
    %3 = arith.cmpi eq, %1, %2 : vector<16x100xi32>
    %4 = arith.extui %3 : vector<16x100xi1> to vector<16x100xi32>
    %5 = arith.sitofp %4 : vector<16x100xi32> to vector<16x100xf32>
    %c0_1 = arith.constant 0 : index
    %c0_2 = arith.constant 0 : index
    %6 = vector.load %arg3[%c0_1, %c0_2] : memref<8x32xf32, #tpu.memory_space<vmem>>, vector<8x32xf32>
    %7 = tpu.concatenate %6, %6 in 0 : vector<8x32xf32>, vector<8x32xf32> -> vector<16x32xf32>
    %c0_3 = arith.constant 0 : index
    %c0_4 = arith.constant 0 : index
    %8 = vector.load %arg2[%c0_3, %c0_4] : memref<100x32xf32, #tpu.memory_space<vmem>>, vector<100x32xf32>
    %cst = arith.constant dense<0.000000e+00> : vector<16x32xf32>
    %9 = tpu.matmul %5, %8, %cst {dimension_numbers = #tpu.dot_dimension_numbers<[1], [0], [0], [1], [0, 0, 1, 1], [], []>} : vector<16x100xf32>, vector<100x32xf32>, vector<16x32xf32> -> vector<16x32xf32>
    %10 = arith.addf %9, %7 : vector<16x32xf32>
    %c0_5 = arith.constant 0 : index
    %c0_6 = arith.constant 0 : index
    %11 = vector.load %arg1[%c0_5, %c0_6] : memref<2x8xi32, #tpu.memory_space<vmem>>, vector<2x8xi32>
    %12 = arith.sitofp %11 : vector<2x8xi32> to vector<2x8xf32>
    %13 = vector.extract_strided_slice %12 {offsets = [0, 0], sizes = [1, 8], strides = [1, 1]} : vector<2x8xf32> to vector<1x8xf32>
    %cst_7 = arith.constant 1.000000e+00 : f32
    %14 = vector.broadcast %cst_7 : f32 to vector<1x8xf32>
    %15 = arith.subf %14, %13 : vector<1x8xf32>
    %cst_8 = arith.constant -1.000000e+09 : f32
    %16 = vector.broadcast %cst_8 : f32 to vector<1x8xf32>
    %17 = arith.mulf %15, %16 : vector<1x8xf32>
    %18 = vector.extract_strided_slice %12 {offsets = [1, 0], sizes = [1, 8], strides = [1, 1]} : vector<2x8xf32> to vector<1x8xf32>
    %cst_9 = arith.constant 1.000000e+00 : f32
    %19 = vector.broadcast %cst_9 : f32 to vector<1x8xf32>
    %20 = arith.subf %19, %18 : vector<1x8xf32>
    %cst_10 = arith.constant -1.000000e+09 : f32
    %21 = vector.broadcast %cst_10 : f32 to vector<1x8xf32>
    %22 = arith.mulf %20, %21 : vector<1x8xf32>
    %cst_11 = arith.constant 0.000000e+00 : f32
    %23 = vector.broadcast %cst_11 : f32 to vector<16x32xf32>
    %c0_12 = arith.constant 0 : index
    %c0_13 = arith.constant 0 : index
    %c0_14 = arith.constant 0 : index
    %24 = vector.load %arg4[%c0_12, %c0_13, %c0_14] : memref<2x32x16xf32, #tpu.memory_space<vmem>>, vector<1x32x16xf32>
    %25 = vector.shape_cast %24 : vector<1x32x16xf32> to vector<32x16xf32>
    %cst_15 = arith.constant dense<0.000000e+00> : vector<16x16xf32>
    %26 = tpu.matmul %10, %25, %cst_15 {dimension_numbers = #tpu.dot_dimension_numbers<[1], [0], [0], [1], [0, 0, 1, 1], [], []>} : vector<16x32xf32>, vector<32x16xf32>, vector<16x16xf32> -> vector<16x16xf32>
    %c0_16 = arith.constant 0 : index
    %c0_17 = arith.constant 0 : index
    %c0_18 = arith.constant 0 : index
    %27 = vector.load %arg5[%c0_16, %c0_17, %c0_18] : memref<2x1x16xf32, #tpu.memory_space<vmem>>, vector<1x1x16xf32>
    %28 = vector.shape_cast %27 : vector<1x1x16xf32> to vector<1x16xf32>
    %29 = vector.broadcast %28 : vector<1x16xf32> to vector<16x16xf32>
    %30 = arith.addf %26, %29 : vector<16x16xf32>
    %c0_19 = arith.constant 0 : index
    %c0_20 = arith.constant 0 : index
    %c0_21 = arith.constant 0 : index
    %31 = vector.load %arg6[%c0_19, %c0_20, %c0_21] : memref<2x32x16xf32, #tpu.memory_space<vmem>>, vector<1x32x16xf32>
    %32 = vector.shape_cast %31 : vector<1x32x16xf32> to vector<32x16xf32>
    %cst_22 = arith.constant dense<0.000000e+00> : vector<16x16xf32>
    %33 = tpu.matmul %10, %32, %cst_22 {dimension_numbers = #tpu.dot_dimension_numbers<[1], [0], [0], [1], [0, 0, 1, 1], [], []>} : vector<16x32xf32>, vector<32x16xf32>, vector<16x16xf32> -> vector<16x16xf32>
    %c0_23 = arith.constant 0 : index
    %c0_24 = arith.constant 0 : index
    %c0_25 = arith.constant 0 : index
    %34 = vector.load %arg7[%c0_23, %c0_24, %c0_25] : memref<2x1x16xf32, #tpu.memory_space<vmem>>, vector<1x1x16xf32>
    %35 = vector.shape_cast %34 : vector<1x1x16xf32> to vector<1x16xf32>
    %36 = vector.broadcast %35 : vector<1x16xf32> to vector<16x16xf32>
    %37 = arith.addf %33, %36 : vector<16x16xf32>
    %c0_26 = arith.constant 0 : index
    %c0_27 = arith.constant 0 : index
    %c0_28 = arith.constant 0 : index
    %38 = vector.load %arg8[%c0_26, %c0_27, %c0_28] : memref<2x32x16xf32, #tpu.memory_space<vmem>>, vector<1x32x16xf32>
    %39 = vector.shape_cast %38 : vector<1x32x16xf32> to vector<32x16xf32>
    %cst_29 = arith.constant dense<0.000000e+00> : vector<16x16xf32>
    %40 = tpu.matmul %10, %39, %cst_29 {dimension_numbers = #tpu.dot_dimension_numbers<[1], [0], [0], [1], [0, 0, 1, 1], [], []>} : vector<16x32xf32>, vector<32x16xf32>, vector<16x16xf32> -> vector<16x16xf32>
    %c0_30 = arith.constant 0 : index
    %c0_31 = arith.constant 0 : index
    %c0_32 = arith.constant 0 : index
    %41 = vector.load %arg9[%c0_30, %c0_31, %c0_32] : memref<2x1x16xf32, #tpu.memory_space<vmem>>, vector<1x1x16xf32>
    %42 = vector.shape_cast %41 : vector<1x1x16xf32> to vector<1x16xf32>
    %43 = vector.broadcast %42 : vector<1x16xf32> to vector<16x16xf32>
    %44 = arith.addf %40, %43 : vector<16x16xf32>
    %45 = vector.extract_strided_slice %30 {offsets = [0, 0], sizes = [8, 16], strides = [1, 1]} : vector<16x16xf32> to vector<8x16xf32>
    %46 = vector.extract_strided_slice %37 {offsets = [0, 0], sizes = [8, 16], strides = [1, 1]} : vector<16x16xf32> to vector<8x16xf32>
    %cst_33 = arith.constant dense<0.000000e+00> : vector<8x8xf32>
    %47 = tpu.matmul %45, %46, %cst_33 {dimension_numbers = #tpu.dot_dimension_numbers<[1], [1], [0], [0], [0, 0, 1, 0], [], []>} : vector<8x16xf32>, vector<8x16xf32>, vector<8x8xf32> -> vector<8x8xf32>
    %cst_34 = arith.constant 2.500000e-01 : f32
    %48 = vector.broadcast %cst_34 : f32 to vector<8x8xf32>
    %49 = arith.mulf %47, %48 : vector<8x8xf32>
    %50 = vector.broadcast %17 : vector<1x8xf32> to vector<8x8xf32>
    %51 = arith.addf %49, %50 : vector<8x8xf32>
    %cst_35 = arith.constant dense<0xFF800000> : vector<8xf32>
    %52 = vector.multi_reduction <maximumf>, %51, %cst_35 [1] : vector<8x8xf32> to vector<8xf32>
    %53 = vector.shape_cast %52 : vector<8xf32> to vector<8x1xf32>
    %54 = vector.broadcast %53 : vector<8x1xf32> to vector<8x8xf32>
    %55 = arith.subf %51, %54 : vector<8x8xf32>
    %56 = math.exp %55 : vector<8x8xf32>
    %cst_36 = arith.constant dense<0.000000e+00> : vector<8xf32>
    %57 = vector.multi_reduction <add>, %56, %cst_36 [1] : vector<8x8xf32> to vector<8xf32>
    %58 = vector.shape_cast %57 : vector<8xf32> to vector<8x1xf32>
    %59 = tpu.reciprocal %58 {approx = true} : vector<8x1xf32> -> vector<8x1xf32>
    %60 = vector.broadcast %59 : vector<8x1xf32> to vector<8x8xf32>
    %61 = arith.mulf %56, %60 : vector<8x8xf32>
    %62 = vector.extract_strided_slice %44 {offsets = [0, 0], sizes = [8, 16], strides = [1, 1]} : vector<16x16xf32> to vector<8x16xf32>
    %cst_37 = arith.constant dense<0.000000e+00> : vector<8x16xf32>
    %63 = tpu.matmul %61, %62, %cst_37 {dimension_numbers = #tpu.dot_dimension_numbers<[1], [0], [0], [1], [0, 0, 1, 1], [], []>} : vector<8x8xf32>, vector<8x16xf32>, vector<8x16xf32> -> vector<8x16xf32>
    %64 = vector.extract_strided_slice %30 {offsets = [8, 0], sizes = [8, 16], strides = [1, 1]} : vector<16x16xf32> to vector<8x16xf32>
    %65 = vector.extract_strided_slice %37 {offsets = [8, 0], sizes = [8, 16], strides = [1, 1]} : vector<16x16xf32> to vector<8x16xf32>
    %cst_38 = arith.constant dense<0.000000e+00> : vector<8x8xf32>
    %66 = tpu.matmul %64, %65, %cst_38 {dimension_numbers = #tpu.dot_dimension_numbers<[1], [1], [0], [0], [0, 0, 1, 0], [], []>} : vector<8x16xf32>, vector<8x16xf32>, vector<8x8xf32> -> vector<8x8xf32>
    %cst_39 = arith.constant 2.500000e-01 : f32
    %67 = vector.broadcast %cst_39 : f32 to vector<8x8xf32>
    %68 = arith.mulf %66, %67 : vector<8x8xf32>
    %69 = vector.broadcast %22 : vector<1x8xf32> to vector<8x8xf32>
    %70 = arith.addf %68, %69 : vector<8x8xf32>
    %cst_40 = arith.constant dense<0xFF800000> : vector<8xf32>
    %71 = vector.multi_reduction <maximumf>, %70, %cst_40 [1] : vector<8x8xf32> to vector<8xf32>
    %72 = vector.shape_cast %71 : vector<8xf32> to vector<8x1xf32>
    %73 = vector.broadcast %72 : vector<8x1xf32> to vector<8x8xf32>
    %74 = arith.subf %70, %73 : vector<8x8xf32>
    %75 = math.exp %74 : vector<8x8xf32>
    %cst_41 = arith.constant dense<0.000000e+00> : vector<8xf32>
    %76 = vector.multi_reduction <add>, %75, %cst_41 [1] : vector<8x8xf32> to vector<8xf32>
    %77 = vector.shape_cast %76 : vector<8xf32> to vector<8x1xf32>
    %78 = tpu.reciprocal %77 {approx = true} : vector<8x1xf32> -> vector<8x1xf32>
    %79 = vector.broadcast %78 : vector<8x1xf32> to vector<8x8xf32>
    %80 = arith.mulf %75, %79 : vector<8x8xf32>
    %81 = vector.extract_strided_slice %44 {offsets = [8, 0], sizes = [8, 16], strides = [1, 1]} : vector<16x16xf32> to vector<8x16xf32>
    %cst_42 = arith.constant dense<0.000000e+00> : vector<8x16xf32>
    %82 = tpu.matmul %80, %81, %cst_42 {dimension_numbers = #tpu.dot_dimension_numbers<[1], [0], [0], [1], [0, 0, 1, 1], [], []>} : vector<8x8xf32>, vector<8x16xf32>, vector<8x16xf32> -> vector<8x16xf32>
    %83 = tpu.concatenate %63, %82 in 0 : vector<8x16xf32>, vector<8x16xf32> -> vector<16x16xf32>
    %c0_43 = arith.constant 0 : index
    %c0_44 = arith.constant 0 : index
    %c0_45 = arith.constant 0 : index
    %84 = vector.load %arg10[%c0_43, %c0_44, %c0_45] : memref<2x16x32xf32, #tpu.memory_space<vmem>>, vector<1x16x32xf32>
    %85 = vector.shape_cast %84 : vector<1x16x32xf32> to vector<16x32xf32>
    %cst_46 = arith.constant dense<0.000000e+00> : vector<16x32xf32>
    %86 = tpu.matmul %83, %85, %cst_46 {dimension_numbers = #tpu.dot_dimension_numbers<[1], [0], [0], [1], [0, 0, 1, 1], [], []>} : vector<16x16xf32>, vector<16x32xf32>, vector<16x32xf32> -> vector<16x32xf32>
    %87 = arith.addf %23, %86 : vector<16x32xf32>
    %c1 = arith.constant 1 : index
    %c0_47 = arith.constant 0 : index
    %c0_48 = arith.constant 0 : index
    %88 = vector.load %arg4[%c1, %c0_47, %c0_48] : memref<2x32x16xf32, #tpu.memory_space<vmem>>, vector<1x32x16xf32>
    %89 = vector.shape_cast %88 : vector<1x32x16xf32> to vector<32x16xf32>
    %cst_49 = arith.constant dense<0.000000e+00> : vector<16x16xf32>
    %90 = tpu.matmul %10, %89, %cst_49 {dimension_numbers = #tpu.dot_dimension_numbers<[1], [0], [0], [1], [0, 0, 1, 1], [], []>} : vector<16x32xf32>, vector<32x16xf32>, vector<16x16xf32> -> vector<16x16xf32>
    %c1_50 = arith.constant 1 : index
    %c0_51 = arith.constant 0 : index
    %c0_52 = arith.constant 0 : index
    %91 = vector.load %arg5[%c1_50, %c0_51, %c0_52] : memref<2x1x16xf32, #tpu.memory_space<vmem>>, vector<1x1x16xf32>
    %92 = vector.shape_cast %91 : vector<1x1x16xf32> to vector<1x16xf32>
    %93 = vector.broadcast %92 : vector<1x16xf32> to vector<16x16xf32>
    %94 = arith.addf %90, %93 : vector<16x16xf32>
    %c1_53 = arith.constant 1 : index
    %c0_54 = arith.constant 0 : index
    %c0_55 = arith.constant 0 : index
    %95 = vector.load %arg6[%c1_53, %c0_54, %c0_55] : memref<2x32x16xf32, #tpu.memory_space<vmem>>, vector<1x32x16xf32>
    %96 = vector.shape_cast %95 : vector<1x32x16xf32> to vector<32x16xf32>
    %cst_56 = arith.constant dense<0.000000e+00> : vector<16x16xf32>
    %97 = tpu.matmul %10, %96, %cst_56 {dimension_numbers = #tpu.dot_dimension_numbers<[1], [0], [0], [1], [0, 0, 1, 1], [], []>} : vector<16x32xf32>, vector<32x16xf32>, vector<16x16xf32> -> vector<16x16xf32>
    %c1_57 = arith.constant 1 : index
    %c0_58 = arith.constant 0 : index
    %c0_59 = arith.constant 0 : index
    %98 = vector.load %arg7[%c1_57, %c0_58, %c0_59] : memref<2x1x16xf32, #tpu.memory_space<vmem>>, vector<1x1x16xf32>
    %99 = vector.shape_cast %98 : vector<1x1x16xf32> to vector<1x16xf32>
    %100 = vector.broadcast %99 : vector<1x16xf32> to vector<16x16xf32>
    %101 = arith.addf %97, %100 : vector<16x16xf32>
    %c1_60 = arith.constant 1 : index
    %c0_61 = arith.constant 0 : index
    %c0_62 = arith.constant 0 : index
    %102 = vector.load %arg8[%c1_60, %c0_61, %c0_62] : memref<2x32x16xf32, #tpu.memory_space<vmem>>, vector<1x32x16xf32>
    %103 = vector.shape_cast %102 : vector<1x32x16xf32> to vector<32x16xf32>
    %cst_63 = arith.constant dense<0.000000e+00> : vector<16x16xf32>
    %104 = tpu.matmul %10, %103, %cst_63 {dimension_numbers = #tpu.dot_dimension_numbers<[1], [0], [0], [1], [0, 0, 1, 1], [], []>} : vector<16x32xf32>, vector<32x16xf32>, vector<16x16xf32> -> vector<16x16xf32>
    %c1_64 = arith.constant 1 : index
    %c0_65 = arith.constant 0 : index
    %c0_66 = arith.constant 0 : index
    %105 = vector.load %arg9[%c1_64, %c0_65, %c0_66] : memref<2x1x16xf32, #tpu.memory_space<vmem>>, vector<1x1x16xf32>
    %106 = vector.shape_cast %105 : vector<1x1x16xf32> to vector<1x16xf32>
    %107 = vector.broadcast %106 : vector<1x16xf32> to vector<16x16xf32>
    %108 = arith.addf %104, %107 : vector<16x16xf32>
    %109 = vector.extract_strided_slice %94 {offsets = [0, 0], sizes = [8, 16], strides = [1, 1]} : vector<16x16xf32> to vector<8x16xf32>
    %110 = vector.extract_strided_slice %101 {offsets = [0, 0], sizes = [8, 16], strides = [1, 1]} : vector<16x16xf32> to vector<8x16xf32>
    %cst_67 = arith.constant dense<0.000000e+00> : vector<8x8xf32>
    %111 = tpu.matmul %109, %110, %cst_67 {dimension_numbers = #tpu.dot_dimension_numbers<[1], [1], [0], [0], [0, 0, 1, 0], [], []>} : vector<8x16xf32>, vector<8x16xf32>, vector<8x8xf32> -> vector<8x8xf32>
    %cst_68 = arith.constant 2.500000e-01 : f32
    %112 = vector.broadcast %cst_68 : f32 to vector<8x8xf32>
    %113 = arith.mulf %111, %112 : vector<8x8xf32>
    %114 = vector.broadcast %17 : vector<1x8xf32> to vector<8x8xf32>
    %115 = arith.addf %113, %114 : vector<8x8xf32>
    %cst_69 = arith.constant dense<0xFF800000> : vector<8xf32>
    %116 = vector.multi_reduction <maximumf>, %115, %cst_69 [1] : vector<8x8xf32> to vector<8xf32>
    %117 = vector.shape_cast %116 : vector<8xf32> to vector<8x1xf32>
    %118 = vector.broadcast %117 : vector<8x1xf32> to vector<8x8xf32>
    %119 = arith.subf %115, %118 : vector<8x8xf32>
    %120 = math.exp %119 : vector<8x8xf32>
    %cst_70 = arith.constant dense<0.000000e+00> : vector<8xf32>
    %121 = vector.multi_reduction <add>, %120, %cst_70 [1] : vector<8x8xf32> to vector<8xf32>
    %122 = vector.shape_cast %121 : vector<8xf32> to vector<8x1xf32>
    %123 = tpu.reciprocal %122 {approx = true} : vector<8x1xf32> -> vector<8x1xf32>
    %124 = vector.broadcast %123 : vector<8x1xf32> to vector<8x8xf32>
    %125 = arith.mulf %120, %124 : vector<8x8xf32>
    %126 = vector.extract_strided_slice %108 {offsets = [0, 0], sizes = [8, 16], strides = [1, 1]} : vector<16x16xf32> to vector<8x16xf32>
    %cst_71 = arith.constant dense<0.000000e+00> : vector<8x16xf32>
    %127 = tpu.matmul %125, %126, %cst_71 {dimension_numbers = #tpu.dot_dimension_numbers<[1], [0], [0], [1], [0, 0, 1, 1], [], []>} : vector<8x8xf32>, vector<8x16xf32>, vector<8x16xf32> -> vector<8x16xf32>
    %128 = vector.extract_strided_slice %94 {offsets = [8, 0], sizes = [8, 16], strides = [1, 1]} : vector<16x16xf32> to vector<8x16xf32>
    %129 = vector.extract_strided_slice %101 {offsets = [8, 0], sizes = [8, 16], strides = [1, 1]} : vector<16x16xf32> to vector<8x16xf32>
    %cst_72 = arith.constant dense<0.000000e+00> : vector<8x8xf32>
    %130 = tpu.matmul %128, %129, %cst_72 {dimension_numbers = #tpu.dot_dimension_numbers<[1], [1], [0], [0], [0, 0, 1, 0], [], []>} : vector<8x16xf32>, vector<8x16xf32>, vector<8x8xf32> -> vector<8x8xf32>
    %cst_73 = arith.constant 2.500000e-01 : f32
    %131 = vector.broadcast %cst_73 : f32 to vector<8x8xf32>
    %132 = arith.mulf %130, %131 : vector<8x8xf32>
    %133 = vector.broadcast %22 : vector<1x8xf32> to vector<8x8xf32>
    %134 = arith.addf %132, %133 : vector<8x8xf32>
    %cst_74 = arith.constant dense<0xFF800000> : vector<8xf32>
    %135 = vector.multi_reduction <maximumf>, %134, %cst_74 [1] : vector<8x8xf32> to vector<8xf32>
    %136 = vector.shape_cast %135 : vector<8xf32> to vector<8x1xf32>
    %137 = vector.broadcast %136 : vector<8x1xf32> to vector<8x8xf32>
    %138 = arith.subf %134, %137 : vector<8x8xf32>
    %139 = math.exp %138 : vector<8x8xf32>
    %cst_75 = arith.constant dense<0.000000e+00> : vector<8xf32>
    %140 = vector.multi_reduction <add>, %139, %cst_75 [1] : vector<8x8xf32> to vector<8xf32>
    %141 = vector.shape_cast %140 : vector<8xf32> to vector<8x1xf32>
    %142 = tpu.reciprocal %141 {approx = true} : vector<8x1xf32> -> vector<8x1xf32>
    %143 = vector.broadcast %142 : vector<8x1xf32> to vector<8x8xf32>
    %144 = arith.mulf %139, %143 : vector<8x8xf32>
    %145 = vector.extract_strided_slice %108 {offsets = [8, 0], sizes = [8, 16], strides = [1, 1]} : vector<16x16xf32> to vector<8x16xf32>
    %cst_76 = arith.constant dense<0.000000e+00> : vector<8x16xf32>
    %146 = tpu.matmul %144, %145, %cst_76 {dimension_numbers = #tpu.dot_dimension_numbers<[1], [0], [0], [1], [0, 0, 1, 1], [], []>} : vector<8x8xf32>, vector<8x16xf32>, vector<8x16xf32> -> vector<8x16xf32>
    %147 = tpu.concatenate %127, %146 in 0 : vector<8x16xf32>, vector<8x16xf32> -> vector<16x16xf32>
    %c1_77 = arith.constant 1 : index
    %c0_78 = arith.constant 0 : index
    %c0_79 = arith.constant 0 : index
    %148 = vector.load %arg10[%c1_77, %c0_78, %c0_79] : memref<2x16x32xf32, #tpu.memory_space<vmem>>, vector<1x16x32xf32>
    %149 = vector.shape_cast %148 : vector<1x16x32xf32> to vector<16x32xf32>
    %cst_80 = arith.constant dense<0.000000e+00> : vector<16x32xf32>
    %150 = tpu.matmul %147, %149, %cst_80 {dimension_numbers = #tpu.dot_dimension_numbers<[1], [0], [0], [1], [0, 0, 1, 1], [], []>} : vector<16x16xf32>, vector<16x32xf32>, vector<16x32xf32> -> vector<16x32xf32>
    %151 = arith.addf %87, %150 : vector<16x32xf32>
    %c0_81 = arith.constant 0 : index
    %c0_82 = arith.constant 0 : index
    %152 = vector.load %arg11[%c0_81, %c0_82] : memref<1x32xf32, #tpu.memory_space<vmem>>, vector<1x32xf32>
    %153 = vector.broadcast %152 : vector<1x32xf32> to vector<16x32xf32>
    %154 = arith.addf %151, %153 : vector<16x32xf32>
    %155 = arith.addf %10, %154 : vector<16x32xf32>
    %c0_83 = arith.constant 0 : index
    %c0_84 = arith.constant 0 : index
    %156 = vector.load %arg12[%c0_83, %c0_84] : memref<1x32xf32, #tpu.memory_space<vmem>>, vector<1x32xf32>
    %c0_85 = arith.constant 0 : index
    %c0_86 = arith.constant 0 : index
    %157 = vector.load %arg13[%c0_85, %c0_86] : memref<1x32xf32, #tpu.memory_space<vmem>>, vector<1x32xf32>
    %cst_87 = arith.constant dense<0.000000e+00> : vector<16xf32>
    %158 = vector.multi_reduction <add>, %155, %cst_87 [1] : vector<16x32xf32> to vector<16xf32>
    %159 = vector.shape_cast %158 : vector<16xf32> to vector<16x1xf32>
    %cst_88 = arith.constant 3.200000e+01 : f32
    %160 = vector.broadcast %cst_88 : f32 to vector<16x1xf32>
    %161 = arith.divf %159, %160 : vector<16x1xf32>
    %162 = vector.broadcast %161 : vector<16x1xf32> to vector<16x32xf32>
    %163 = arith.subf %155, %162 : vector<16x32xf32>
    %164 = arith.mulf %163, %163 : vector<16x32xf32>
    %cst_89 = arith.constant dense<0.000000e+00> : vector<16xf32>
    %165 = vector.multi_reduction <add>, %164, %cst_89 [1] : vector<16x32xf32> to vector<16xf32>
    %166 = vector.shape_cast %165 : vector<16xf32> to vector<16x1xf32>
    %cst_90 = arith.constant 3.200000e+01 : f32
    %167 = vector.broadcast %cst_90 : f32 to vector<16x1xf32>
    %168 = arith.divf %166, %167 : vector<16x1xf32>
    %169 = vector.broadcast %161 : vector<16x1xf32> to vector<16x32xf32>
    %170 = arith.subf %155, %169 : vector<16x32xf32>
    %cst_91 = arith.constant 9.99999974E-6 : f32
    %171 = vector.broadcast %cst_91 : f32 to vector<16x1xf32>
    %172 = arith.addf %168, %171 : vector<16x1xf32>
    %173 = math.rsqrt %172 : vector<16x1xf32>
    %174 = vector.broadcast %173 : vector<16x1xf32> to vector<16x32xf32>
    %175 = arith.mulf %170, %174 : vector<16x32xf32>
    %176 = vector.broadcast %156 : vector<1x32xf32> to vector<16x32xf32>
    %177 = arith.mulf %175, %176 : vector<16x32xf32>
    %178 = vector.broadcast %157 : vector<1x32xf32> to vector<16x32xf32>
    %179 = arith.addf %177, %178 : vector<16x32xf32>
    %c0_92 = arith.constant 0 : index
    %c0_93 = arith.constant 0 : index
    %180 = vector.load %arg14[%c0_92, %c0_93] : memref<32x64xf32, #tpu.memory_space<vmem>>, vector<32x64xf32>
    %cst_94 = arith.constant dense<0.000000e+00> : vector<16x64xf32>
    %181 = tpu.matmul %179, %180, %cst_94 {dimension_numbers = #tpu.dot_dimension_numbers<[1], [0], [0], [1], [0, 0, 1, 1], [], []>} : vector<16x32xf32>, vector<32x64xf32>, vector<16x64xf32> -> vector<16x64xf32>
    %c0_95 = arith.constant 0 : index
    %c0_96 = arith.constant 0 : index
    %182 = vector.load %arg15[%c0_95, %c0_96] : memref<1x64xf32, #tpu.memory_space<vmem>>, vector<1x64xf32>
    %183 = vector.broadcast %182 : vector<1x64xf32> to vector<16x64xf32>
    %184 = arith.addf %181, %183 : vector<16x64xf32>
    %cst_97 = arith.constant 0.000000e+00 : f32
    %185 = vector.broadcast %cst_97 : f32 to vector<16x64xf32>
    %186 = arith.maximumf %184, %185 : vector<16x64xf32>
    %c0_98 = arith.constant 0 : index
    %c0_99 = arith.constant 0 : index
    %187 = vector.load %arg16[%c0_98, %c0_99] : memref<64x32xf32, #tpu.memory_space<vmem>>, vector<64x32xf32>
    %cst_100 = arith.constant dense<0.000000e+00> : vector<16x32xf32>
    %188 = tpu.matmul %186, %187, %cst_100 {dimension_numbers = #tpu.dot_dimension_numbers<[1], [0], [0], [1], [0, 0, 1, 1], [], []>} : vector<16x64xf32>, vector<64x32xf32>, vector<16x32xf32> -> vector<16x32xf32>
    %c0_101 = arith.constant 0 : index
    %c0_102 = arith.constant 0 : index
    %189 = vector.load %arg17[%c0_101, %c0_102] : memref<1x32xf32, #tpu.memory_space<vmem>>, vector<1x32xf32>
    %190 = vector.broadcast %189 : vector<1x32xf32> to vector<16x32xf32>
    %191 = arith.addf %188, %190 : vector<16x32xf32>
    %192 = arith.addf %179, %191 : vector<16x32xf32>
    %c0_103 = arith.constant 0 : index
    %c0_104 = arith.constant 0 : index
    %193 = vector.load %arg18[%c0_103, %c0_104] : memref<1x32xf32, #tpu.memory_space<vmem>>, vector<1x32xf32>
    %c0_105 = arith.constant 0 : index
    %c0_106 = arith.constant 0 : index
    %194 = vector.load %arg19[%c0_105, %c0_106] : memref<1x32xf32, #tpu.memory_space<vmem>>, vector<1x32xf32>
    %cst_107 = arith.constant dense<0.000000e+00> : vector<16xf32>
    %195 = vector.multi_reduction <add>, %192, %cst_107 [1] : vector<16x32xf32> to vector<16xf32>
    %196 = vector.shape_cast %195 : vector<16xf32> to vector<16x1xf32>
    %cst_108 = arith.constant 3.200000e+01 : f32
    %197 = vector.broadcast %cst_108 : f32 to vector<16x1xf32>
    %198 = arith.divf %196, %197 : vector<16x1xf32>
    %199 = vector.broadcast %198 : vector<16x1xf32> to vector<16x32xf32>
    %200 = arith.subf %192, %199 : vector<16x32xf32>
    %201 = arith.mulf %200, %200 : vector<16x32xf32>
    %cst_109 = arith.constant dense<0.000000e+00> : vector<16xf32>
    %202 = vector.multi_reduction <add>, %201, %cst_109 [1] : vector<16x32xf32> to vector<16xf32>
    %203 = vector.shape_cast %202 : vector<16xf32> to vector<16x1xf32>
    %cst_110 = arith.constant 3.200000e+01 : f32
    %204 = vector.broadcast %cst_110 : f32 to vector<16x1xf32>
    %205 = arith.divf %203, %204 : vector<16x1xf32>
    %206 = vector.broadcast %198 : vector<16x1xf32> to vector<16x32xf32>
    %207 = arith.subf %192, %206 : vector<16x32xf32>
    %cst_111 = arith.constant 9.99999974E-6 : f32
    %208 = vector.broadcast %cst_111 : f32 to vector<16x1xf32>
    %209 = arith.addf %205, %208 : vector<16x1xf32>
    %210 = math.rsqrt %209 : vector<16x1xf32>
    %211 = vector.broadcast %210 : vector<16x1xf32> to vector<16x32xf32>
    %212 = arith.mulf %207, %211 : vector<16x32xf32>
    %213 = vector.broadcast %193 : vector<1x32xf32> to vector<16x32xf32>
    %214 = arith.mulf %212, %213 : vector<16x32xf32>
    %215 = vector.broadcast %194 : vector<1x32xf32> to vector<16x32xf32>
    %216 = arith.addf %214, %215 : vector<16x32xf32>
    %217 = vector.extract_strided_slice %216 {offsets = [0, 0], sizes = [1, 32], strides = [1, 1]} : vector<16x32xf32> to vector<1x32xf32>
    %218 = vector.extract_strided_slice %216 {offsets = [8, 0], sizes = [1, 32], strides = [1, 1]} : vector<16x32xf32> to vector<1x32xf32>
    %219 = tpu.concatenate %217, %218 in 0 : vector<1x32xf32>, vector<1x32xf32> -> vector<2x32xf32>
    %c0_112 = arith.constant 0 : index
    %c0_113 = arith.constant 0 : index
    %220 = vector.load %arg20[%c0_112, %c0_113] : memref<32x32xf32, #tpu.memory_space<vmem>>, vector<32x32xf32>
    %cst_114 = arith.constant dense<0.000000e+00> : vector<2x32xf32>
    %221 = tpu.matmul %219, %220, %cst_114 {dimension_numbers = #tpu.dot_dimension_numbers<[1], [0], [0], [1], [0, 0, 1, 1], [], []>} : vector<2x32xf32>, vector<32x32xf32>, vector<2x32xf32> -> vector<2x32xf32>
    %c0_115 = arith.constant 0 : index
    %c0_116 = arith.constant 0 : index
    %222 = vector.load %arg21[%c0_115, %c0_116] : memref<1x32xf32, #tpu.memory_space<vmem>>, vector<1x32xf32>
    %223 = vector.broadcast %222 : vector<1x32xf32> to vector<2x32xf32>
    %224 = arith.addf %221, %223 : vector<2x32xf32>
    %cst_117 = arith.constant 0.000000e+00 : f32
    %225 = vector.broadcast %cst_117 : f32 to vector<2x32xf32>
    %226 = arith.maximumf %224, %225 : vector<2x32xf32>
    %c0_118 = arith.constant 0 : index
    %c0_119 = arith.constant 0 : index
    %227 = vector.load %arg22[%c0_118, %c0_119] : memref<32x128xf32, #tpu.memory_space<vmem>>, vector<32x128xf32>
    %cst_120 = arith.constant dense<0.000000e+00> : vector<2x128xf32>
    %228 = tpu.matmul %226, %227, %cst_120 {dimension_numbers = #tpu.dot_dimension_numbers<[1], [0], [0], [1], [0, 0, 1, 1], [], []>} : vector<2x32xf32>, vector<32x128xf32>, vector<2x128xf32> -> vector<2x128xf32>
    %c0_121 = arith.constant 0 : index
    %c0_122 = arith.constant 0 : index
    %229 = vector.load %arg23[%c0_121, %c0_122] : memref<1x128xf32, #tpu.memory_space<vmem>>, vector<1x128xf32>
    %230 = vector.broadcast %229 : vector<1x128xf32> to vector<2x128xf32>
    %231 = arith.addf %228, %230 : vector<2x128xf32>
    %c0_123 = arith.constant 0 : index
    %c0_124 = arith.constant 0 : index
    %232 = vector.load %arg24[%c0_123, %c0_124] : memref<2x128xf32, #tpu.memory_space<vmem>>, vector<2x128xf32>
    tpu.vector_store %arg24[%c0_123, %c0_124], %231 {strides = array<i32>} : memref<2x128xf32, #tpu.memory_space<vmem>>, vector<2x128xf32>,
    return
  }
}

</mosaic_0001>

<bundles_post_ra>
// kernel: tpu_custom_call.1
= control target key start
LH: loop header
LB: loop body
LE: loop exit
PB: predicated region body
PF: predicated region fallthrough
CT: control target
= control target key end

     0   :  { %s2956_s0 = inlined_call_operand.vmem [shape: s32[16,1], index: 0, kind: input, shape index: {}]   ;;  %s2957_s1 = inlined_call_operand.vmem [shape: s32[2,8], index: 1, kind: input, shape index: {}]   ;;  %s2958_s2 = inlined_call_operand.vmem [shape: f32[100,32], index: 2, kind: input, shape index: {}]   ;;  %s2959_s3 = inlined_call_operand.vmem [shape: f32[8,32], index: 3, kind: input, shape index: {}]   ;;  %s2960_s4 = inlined_call_operand.vmem [shape: f32[2,32,16], index: 4, kind: input, shape index: {}]   ;;  %s2961_s5 = inlined_call_operand.vmem [shape: f32[2,1,16], index: 5, kind: input, shape index: {}]   ;;  %s2962_s6 = inlined_call_operand.vmem [shape: f32[2,32,16], index: 6, kind: input, shape index: {}]   ;;  %s2963_s7 = inlined_call_operand.vmem [shape: f32[2,1,16], index: 7, kind: input, shape index: {}]   ;;  %s2964_s8 = inlined_call_operand.vmem [shape: f32[2,32,16], index: 8, kind: input, shape index: {}]   ;;  %s2965_s9 = inlined_call_operand.vmem [shape: f32[2,1,16], index: 9, kind: input, shape index: {}]   ;;  %s2966_s10 = inlined_call_operand.vmem [shape: f32[2,16,32], index: 10, kind: input, shape index: {}]   ;;  %s2967_s11 = inlined_call_operand.vmem [shape: f32[1,32], index: 11, kind: input, shape index: {}]   ;;  %s2968_s12 = inlined_call_operand.vmem [shape: f32[1,32], index: 12, kind: input, shape index: {}]   ;;  %s2969_s13 = inlined_call_operand.vmem [shape: f32[1,32], index: 13, kind: input, shape index: {}]   ;;  %s2970_s14 = inlined_call_operand.vmem [shape: f32[32,64], index: 14, kind: input, shape index: {}]   ;;  %s2971_s15 = inlined_call_operand.vmem [shape: f32[1,64], index: 15, kind: input, shape index: {}]   ;;  %s2972_s16 = inlined_call_operand.vmem [shape: f32[64,32], index: 16, kind: input, shape index: {}]   ;;  %s2973_s17 = inlined_call_operand.vmem [shape: f32[1,32], index: 17, kind: input, shape index: {}]   ;;  %s2974_s18 = inlined_call_operand.vmem [shape: f32[1,32], index: 18, kind: input, shape index: {}]   ;;  %s2975_s19 = inlined_call_operand.vmem [shape: f32[1,32], index: 19, kind: input, shape index: {}]   ;;  %s2976_s20 = inlined_call_operand.vmem [shape: f32[32,32], index: 20, kind: input, shape index: {}]   ;;  %s2977_s21 = inlined_call_operand.vmem [shape: f32[1,32], index: 21, kind: input, shape index: {}]   ;;  %s2978_s22 = inlined_call_operand.vmem [shape: f32[32,128], index: 22, kind: input, shape index: {}]   ;;  %s2979_s23 = inlined_call_operand.vmem [shape: f32[1,128], index: 23, kind: input, shape index: {}]   ;;  %s2980_s24 = inlined_call_operand.hbm [shape: f32[2,128], index: 24, kind: output, shape index: {}]  }
   0x1   :  { %2988 = sst [smem:[#allocation5_spill]] %s2956_s0 }
   0x2   :  { %2989 = sst [smem:[#allocation6_spill]] %s2957_s1 }
   0x3   :  { %2990 = sst [smem:[#allocation7_spill]] %s2958_s2 }
   0x4   :  { %2991 = sst [smem:[#allocation8_spill]] %s2959_s3 }
   0x5   :  { %2992 = sst [smem:[#allocation9_spill]] %s2960_s4 }
   0x6   :  { %2993 = sst [smem:[#allocation10_spill]] %s2961_s5 }
   0x7   :  { %2994 = sst [smem:[#allocation11_spill]] %s2962_s6 }
   0x8   :  { %2995 = sst [smem:[#allocation12_spill]] %s2963_s7 }
   0x9   :  { %2996 = sst [smem:[#allocation13_spill]] %s2964_s8 }
   0xa   :  { %2997 = sst [smem:[#allocation14_spill]] %s2975_s19 }
   0xb   :  { %s2998_s27 = sld [smem:[#allocation5_spill]]  ;;  %vm115_vm0 = vcmask 1043456   ;;  %v2458_v2 = vmov 0  }
   0xc   :  { %s2999_s19 = sld [smem:[#allocation7_spill]]  ;;  %2411 = vset.pattern.permute.xlu0 %v2458_v2 }
   0xd   :  { %s3000_s5 = sld [smem:[#allocation9_spill]] }
  0x11   :  { %v78_v0 = vld [vmem:[%s2998_s27] sm:$0xff]  ;;  %v79_v5 = vld [vmem:[%s2998_s27 + $0x8] sm:$0xff] }
  0x12   :  { %v107_v1 = vld [vmem:[%s2999_s19 + $0x60] sm:$0xf]  ;;  %v106_v3 = vld [vmem:[%s2999_s19 + $0x58] sm:$0xff]  ;;  %83 = vperm.xlu0 %2411, %v78_v0   ;;  %v105_v4 = vld [vmem:[%s2999_s19 + $0x50] sm:$0xff] }
  0x13   :  { %2206 = vmatprep.subr.msk.mxu0 %vm115_vm0, %v107_v1  ;;  %v104_v6 = vld [vmem:[%s2999_s19 + $0x48] sm:$0xff]  ;;  %v201_v7 = vld [vmem:[%s3000_s5 + $0x18] sm:$0xff] }
  0x14   :  { %2207 = vmatpush3.msk.msra.mxu0 %vm115_vm0, %v107_v1 }
  0x15   :  { %2208 = vmatprep.subr.mxu0 %v106_v3 }
  0x16   :  { %2209 = vmatpush3.msra.mxu0 %v106_v3 }
  0x17   :  { %2210 = vmatprep.subr.mxu0 %v105_v4 }
  0x18   :  { %29 = vsyncpa [#allocation3], 0  ;;  %86 = vperm.xlu0 %2411, %v79_v5   ;;  %2211 = vmatpush3.msra.mxu0 %v105_v4  ;;  %v103_v8 = vld [vmem:[%s2999_s19 + $0x40] sm:$0xff]  ;;  %v200_v9 = vld [vmem:[%s3000_s5 + $0x10] sm:$0xff]  ;;  %v2459_v18 = vmov 0.0   ;;  %v80_v19 = vlaneseq  ;;  %vm108_vm1 = vcmask 818176  }
  0x19   :  { %2212 = vmatprep.subr.mxu0 %v104_v6  ;;  %2235 = vmatprep.subr.mxu1 %v201_v7  ;;  %v102_v10 = vld [vmem:[%s2999_s19 + $0x38] sm:$0xff]  ;;  %v101_v11 = vld [vmem:[%s2999_s19 + $0x30] sm:$0xff]  ;;  %v100_v12 = vld [vmem:[%s2999_s19 + $0x28] sm:$0xff]  ;;  %s3001_s8 = sld [smem:[#allocation11_spill]]  ;;  %vm209_vm4 = vcmask 261120   ;;  %vm2460_vm5 = vmmov 0  }
  0x1a   :  { %2213 = vmatpush3.msra.mxu0 %v104_v6  ;;  %2236 = vmatpush3.msra.mxu1 %v201_v7  ;;  %v99_v13 = vld [vmem:[%s2999_s19 + $0x20] sm:$0xff]  ;;  %v98_v14 = vld [vmem:[%s2999_s19 + $0x18] sm:$0xff]  ;;  %v97_v15 = vld [vmem:[%s2999_s19 + $0x10] sm:$0xff]  ;;  %v81_v20 = vand.u32 127, %v80_v19  ;;  %s3002_s26 = sld [smem:[#allocation8_spill]]  ;;  %vm463_vm6 = vcmask 130048  }
  0x1b   :  { %2214 = vmatprep.subr.mxu0 %v103_v8  ;;  %2237 = vmatprep.subr.mxu1 %v200_v9  ;;  %v96_v16 = vld [vmem:[%s2999_s19 + $0x8] sm:$0xff]  ;;  %v95_v17 = vld [vmem:[%s2999_s19] sm:$0xff]  ;;  %s3003_s30 = sld [smem:[#allocation13_spill]]  ;;  %v2057_v46 = vld [vmem:[%s3000_s5 + $0x38] sm:$0xff]  ;;  %v542_v1 = vshrl.u32 %v80_v19, 7  ;;  %vm546_vm7 = vcmask 64512  }
  0x1c   :  { %2215 = vmatpush3.msra.mxu0 %v103_v8  ;;  %2238 = vmatpush3.msra.mxu1 %v200_v9  ;;  %v199_v25 = vld [vmem:[%s3000_s5 + $0x8] sm:$0xff]  ;;  %v198_v26 = vld [vmem:[%s3000_s5] sm:$0xff]  ;;  %s3004_s2 = sld [smem:[#allocation12_spill]]  ;;  %v2056_v50 = vld [vmem:[%s3000_s5 + $0x30] sm:$0xff]  ;;  %vm1717_vm8 = vcmask 523264   ;;  %vm1848_vm9 = vcmask 1040384  }
  0x1d   :  { %2216 = vmatprep.subr.mxu0 %v102_v10  ;;  %2239 = vmatprep.subr.mxu1 %v199_v25  ;;  %s3005_s0 = sld [smem:[#allocation10_spill]]  ;;  %v2045_v52 = vld [vmem:[%s2965_s9] ss:$0 sm:$0xff]  ;;  %v2055_v53 = vld [vmem:[%s3000_s5 + $0x28] sm:$0xff]  ;;  %v543_v3 = vsub.s32 0, %v542_v1  ;;  %v710_v5 = vsub.s32 1, %v542_v1 }
  0x1e   :  { %2217 = vmatpush3.msra.mxu0 %v102_v10  ;;  %2240 = vmatpush3.msra.mxu1 %v199_v25  ;;  %v2054_v56 = vld [vmem:[%s3000_s5 + $0x20] sm:$0xff]  ;;  %s3006_s27 = sld [smem:[#allocation6_spill]]  ;;  %s2461_s6 = smov [#allocation2]  }
  0x1f   :  { %2218 = vmatprep.subr.mxu0 %v101_v11  ;;  %2241 = vmatprep.subr.mxu1 %v198_v26  ;;  %v294_v27 = vld [vmem:[%s3001_s8 + $0x18] sm:$0xff]  ;;  %v293_v33 = vld [vmem:[%s3001_s8 + $0x10] sm:$0xff]  ;;  %v292_v34 = vld [vmem:[%s3001_s8 + $0x8] sm:$0xff]  ;;  %s3007_s3 = sld [smem:[#allocation14_spill]] }
  0x20   :  { %2219 = vmatpush3.msra.mxu0 %v101_v11  ;;  %2242 = vmatpush3.msra.mxu1 %v198_v26  ;;  %v94_v29 = vld [vmem:[%s3002_s26] sm:$0xff] }
  0x21   :  { %2220 = vmatprep.subr.mxu0 %v100_v12  ;;  %2246 = vmatprep.subr.mxu1 %v294_v27  ;;  %v291_v35 = vld [vmem:[%s3001_s8] sm:$0xff]  ;;  %v380_v36 = vld [vmem:[%s3003_s30 + $0x18] sm:$0xff]  ;;  %v379_v37 = vld [vmem:[%s3003_s30 + $0x10] sm:$0xff] }
  0x22   :  { %2221 = vmatpush3.msra.mxu0 %v100_v12  ;;  %v378_v38 = vld [vmem:[%s3003_s30 + $0x8] sm:$0xff]  ;;  %v377_v39 = vld [vmem:[%s3003_s30] sm:$0xff]  ;;  %v2073_v59 = vld [vmem:[%s3003_s30 + $0x38] sm:$0xff] }
  0x23   :  { %2222 = vmatprep.subr.mxu0 %v99_v13  ;;  %v2042_v42 = vld [vmem:[%s3004_s2] ss:$0 sm:$0xff]  ;;  %v2072_v60 = vld [vmem:[%s3003_s30 + $0x30] sm:$0xff]  ;;  %v2071_v61 = vld [vmem:[%s3003_s30 + $0x28] sm:$0xff] }
  0x24   :  { %2223 = vmatpush3.msra.mxu0 %v99_v13  ;;  %v2039_v44 = vld [vmem:[%s3005_s0] ss:$0 sm:$0xff] }
  0x25   :  { %2224 = vmatprep.subr.mxu0 %v98_v14  ;;  %v2070_v62 = vld [vmem:[%s3003_s30 + $0x20] sm:$0xff] }
  0x26   :  { %2225 = vmatpush3.msra.mxu0 %v98_v14  ;;  %v194_v63 = vld [vmem:[%s3006_s27] sm:$0x3] }
  0x27   :  { %2226 = vmatprep.subr.mxu0 %v97_v15  ;;  %v195_v0 = vcvt.s32.f32 %v194_v63 }
  0x28   :  { %2227 = vmatpush3.msra.mxu0 %v97_v15 }
  0x29   :  { %2228 = vmatprep.subr.mxu0 %v96_v16  ;;  %v196_v2 = vsub.f32 1.0, %v195_v0 }
  0x2a   :  { %2229 = vmatpush3.msra.mxu0 %v96_v16 }
  0x2b   :  { %2230 = vmatprep.subr.mxu0 %v95_v17  ;;  %v197_v4 = vmul.f32 -1e+09, %v196_v2 }
  0x2c   :  { %2231 = vmatpush3.msra.mxu0 %v95_v17 }
  0x2d   :  { %2268 = vmatprep.subr.mxu0 %v2459_v18  ;;  %v2754_v7 = vrot.slane %v197_v4, %v543_v3  ;;  %v2756_v12 = vrot.slane %v197_v4, %v710_v5 }
  0x8d   :  { %v84_v21 = vpop.permute.xlu0 %83 }
  0x8e   :  { %vm88_vm2 = vcmp.eq.s32.totalorder %v81_v20, %v84_v21  ;;  %v2075_v21 = vld [vmem:[%s2965_s9 + $0x1] ss:$0 sm:$0xff] }
  0x8f   :  { %v2034_v22 = vsel %vm88_vm2, 1.0, %v2459_v18 }
  0x90   :  { %2232 = vmatprep.mubr.msk.f32.mxu0 %vm108_vm1, %v2034_v22 }
  0x93   :  { %v87_v23 = vpop.permute.xlu0 %86 }
  0x94   :  { %vm89_vm3 = vcmp.eq.s32.totalorder %v81_v20, %v87_v23 }
  0x95   :  { %v2035_v24 = vsel %vm89_vm3, 1.0, %v2459_v18 }
  0x96   :  { %2233 = vmatmul.mubr.msk.f32.vlgmr.msra.gmra.mxu0 %vm108_vm1, %v2035_v24 }
  0x97   :  { %2270 = vmatprep.mubr.msk.f32.mxu0 %vm2460_vm5, %v2459_v18 }
 0x156   :  { %v2234_v28 = vpop.f32.mrf.mxu0 }
 0x157   :  { %v2656_v32 = vadd.f32 %v2234_v28, %v94_v29 }
 0x158   :  { %v185_v30 = vpop.f32.mrf.mxu0 }
 0x159   :  { %v2654_v31 = vadd.f32 %v185_v30, %v94_v29 }
 0x15b   :  { %2243 = vmatprep.mubr.msk.f32.mxu1 %vm209_vm4, %v2654_v31 }
 0x15c   :  { %2244 = vmatmul.mubr.msk.f32.vlgmr.msra.gmra.mxu1 %vm209_vm4, %v2656_v32 }
 0x15d   :  { %2247 = vmatpush3.msra.mxu1 %v294_v27  ;;  %2254 = vmatprep.mubr.msk.f32.mxu1 %vm209_vm4, %v2654_v31 }
 0x15e   :  { %2248 = vmatprep.subr.mxu1 %v293_v33 }
 0x15f   :  { %2249 = vmatpush3.msra.mxu1 %v293_v33 }
 0x160   :  { %2250 = vmatprep.subr.mxu1 %v292_v34 }
 0x161   :  { %2251 = vmatpush3.msra.mxu1 %v292_v34 }
 0x162   :  { %2252 = vmatprep.subr.mxu1 %v291_v35 }
 0x163   :  { %2253 = vmatpush3.msra.mxu1 %v291_v35 }
 0x164   :  { %2255 = vmatmul.mubr.msk.f32.vlgmr.msra.gmra.mxu1 %vm209_vm4, %v2656_v32  ;;  %2257 = vmatprep.subr.mxu1 %v380_v36 }
 0x165   :  { %2258 = vmatpush3.msra.mxu1 %v380_v36  ;;  %2265 = vmatprep.mubr.msk.f32.mxu1 %vm209_vm4, %v2654_v31 }
 0x166   :  { %2259 = vmatprep.subr.mxu1 %v379_v37 }
 0x167   :  { %2260 = vmatpush3.msra.mxu1 %v379_v37 }
 0x168   :  { %2261 = vmatprep.subr.mxu1 %v378_v38 }
 0x169   :  { %2262 = vmatpush3.msra.mxu1 %v378_v38 }
 0x16a   :  { %2263 = vmatprep.subr.mxu1 %v377_v39 }
 0x16b   :  { %2264 = vmatpush3.msra.mxu1 %v377_v39 }
 0x16c   :  { %2266 = vmatmul.mubr.msk.f32.vlgmr.msra.gmra.mxu1 %vm209_vm4, %v2656_v32  ;;  %2278 = vmatprep.subr.mxu1 %v2459_v18 }
 0x16d   :  { %2280 = vmatprep.mubr.msk.f32.mxu1 %vm2460_vm5, %v2459_v18 }
 0x21c   :  { %v2245_v40 = vpop.f32.mrf.mxu1 }
 0x21d   :  { %v288_v49 = vadd.f32 %v2245_v40, %v2039_v44  ;;  %v2065_v40 = vld [vmem:[%s3001_s8 + $0x38] sm:$0xff] }
 0x21e   :  { %v282_v41 = vpop.f32.mrf.mxu1 }
 0x21f   :  { %v283_v51 = vadd.f32 %v2039_v44, %v282_v41  ;;  %v2063_v44 = vld [vmem:[%s3001_s8 + $0x28] sm:$0xff] }
 0x224   :  { %v2256_v43 = vpop.f32.mrf.mxu1 }
 0x225   :  { %v374_v45 = vadd.f32 %v2256_v43, %v2042_v42  ;;  %v2064_v43 = vld [vmem:[%s3001_s8 + $0x30] sm:$0xff] }
 0x226   :  { %v368_v47 = vpop.f32.mrf.mxu1 }
 0x227   :  { %v369_v48 = vadd.f32 %v2042_v42, %v368_v47  ;;  %2279 = vmatpush3.xpose.msk.msra.mxu1 %vm463_vm6, %v374_v45  ;;  %v2062_v45 = vld [vmem:[%s3001_s8 + $0x20] sm:$0xff] }
 0x228   :  { %2288 = vmatprep.subr.mxu1 %v2057_v46 }
 0x229   :  { %2269 = vmatpush3.xpose.msk.msra.mxu0 %vm463_vm6, %v369_v48 }
 0x22a   :  { %2281 = vmatmul.mubr.msk.f32.vlgmr.msra.gmra.mxu1 %vm463_vm6, %v288_v49  ;;  %2273 = vmatprep.subr.mxu0 %v2459_v18 }
 0x22b   :  { %2289 = vmatpush3.msra.mxu1 %v2057_v46  ;;  %2296 = vmatprep.mubr.msk.f32.mxu1 %vm209_vm4, %v2654_v31 }
 0x22c   :  { %v2267_v54 = vpop.f32.mrf.mxu1  ;;  %2271 = vmatmul.mubr.msk.f32.vlgmr.msra.gmra.mxu0 %vm463_vm6, %v283_v51  ;;  %2290 = vmatprep.subr.mxu1 %v2056_v50 }
 0x22d   :  { %v2721_v55 = vadd.f32 %v2267_v54, %v2045_v52  ;;  %2291 = vmatpush3.msra.mxu1 %v2056_v50  ;;  %2275 = vmatprep.mubr.msk.f32.mxu0 %vm2460_vm5, %v2459_v18  ;;  %v2067_v50 = vld [vmem:[%s3004_s2 + $0x1] ss:$0 sm:$0xff]  ;;  %s2026_s2 = sshll.u32 %s2461_s6, 4  ;;  %s2027_s2 = int_to_ptr.vmem [resolvable:$true] %s2026_s2 }
 0x22e   :  { %v454_v57 = vpop.f32.mrf.mxu1  ;;  %2292 = vmatprep.subr.mxu1 %v2055_v53  ;;  %p2441_p1 = scmp.lt.s32.totalorder %s2027_s2, %s2027_s2 }
 0x22f   :  { %v455_v58 = vadd.f32 %v2045_v52, %v454_v57  ;;  %2293 = vmatpush3.msra.mxu1 %v2055_v53  ;;  %v2059_v52 = vld [vmem:[%s3005_s0 + $0x1] ss:$0 sm:$0xff] }
 0x230   :  { %2294 = vmatprep.subr.mxu1 %v2054_v56 }
 0x231   :  { %2274 = vmatpush3.msra.mxu0 %v455_v58  ;;  %2295 = vmatpush3.msra.mxu1 %v2054_v56 }
 0x232   :  { %2297 = vmatmul.mubr.msk.f32.vlgmr.msra.gmra.mxu1 %vm209_vm4, %v2656_v32  ;;  %2310 = vmatprep.subr.mxu1 %v2073_v59 }
 0x233   :  { %2311 = vmatpush3.msra.mxu1 %v2073_v59  ;;  %2318 = vmatprep.mubr.msk.f32.mxu1 %vm209_vm4, %v2654_v31 }
 0x234   :  { %2312 = vmatprep.subr.mxu1 %v2072_v60  ;;  %2283 = vmatprep.subr.mxu0 %v2459_v18 }
 0x235   :  { %2313 = vmatpush3.msra.mxu1 %v2072_v60 }
 0x236   :  { %2314 = vmatprep.subr.mxu1 %v2071_v61 }
 0x237   :  { %2315 = vmatpush3.msra.mxu1 %v2071_v61 }
 0x238   :  { %2316 = vmatprep.subr.mxu1 %v2070_v62 }
 0x239   :  { %2317 = vmatpush3.msra.mxu1 %v2070_v62 }
 0x23a   :  { %2319 = vmatmul.mubr.msk.f32.vlgmr.msra.gmra.mxu1 %vm209_vm4, %v2656_v32  ;;  %2331 = vmatprep.subr.mxu1 %v2459_v18 }
 0x23b   :  { %2333 = vmatprep.mubr.msk.f32.mxu1 %vm2460_vm5, %v2459_v18 }
 0x2ea   :  { %v703_v6 = vpop.f32.mrf.mxu1 }
 0x2eb   :  { %v707_v10 = vmul.f32 0.25, %v703_v6 }
 0x2ec   :  { %v536_v8 = vpop.f32.mrf.mxu0  ;;  %v2282_v9 = vpop.f32.mrf.mxu1 }
 0x2ed   :  { %v540_v11 = vmul.f32 0.25, %v536_v8  ;;  %v712_v16 = vadd.f32 %v2756_v12, %v707_v10 }
 0x2ee   :  { %v2272_v13 = vpop.f32.mrf.mxu0 }
 0x2ef   :  { %v545_v14 = vadd.f32 %v2754_v7, %v540_v11  ;;  %v713_v19 = vsel %vm546_vm7, %v712_v16, -inf }
 0x2f1   :  { %v547_v15 = vsel %vm546_vm7, %v545_v14, -inf }
 0x2f2   :  { %548 = vmax.xlane.f32.xlu1 %v547_v15  ;;  %v2298_v17 = vpop.f32.mrf.mxu1 }
 0x2f3   :  { %v884_v56 = vadd.f32 %v2298_v17, %v2059_v52 }
 0x2f4   :  { %v878_v20 = vpop.f32.mrf.mxu1 }
 0x2f5   :  { %v879_v58 = vadd.f32 %v2059_v52, %v878_v20 }
 0x2f6   :  { %714 = vmax.xlane.f32.xlu1 %v713_v19 }
 0x2fa   :  { %v2320_v22 = vpop.f32.mrf.mxu1 }
 0x2fb   :  { %v2765_v23 = vadd.f32 %v2320_v22, %v2075_v21 }
 0x2fc   :  { %v1054_v57 = vpop.f32.mrf.mxu1 }
 0x2fd   :  { %v1055_v59 = vadd.f32 %v2075_v21, %v1054_v57  ;;  %v798_v21 = vld [vmem:[%s2966_s10 + $0x8] sm:$0xff]  ;;  %v1608_v57 = vld [vmem:[%s2970_s14] sm:$0xff] }
 0x37b   :  { %v549_v24 = vpop.xlane.xlu1 %548 }
 0x37c   :  { %v550_v25 = vsub.f32 %v545_v14, %v549_v24 }
 0x37e   :  { %v551_v26 = vmul.f32 1.442695, %v550_v25  ;;  %v797_v25 = vld [vmem:[%s2966_s10] sm:$0xff] }
 0x37f   :  { %v715_v27 = vpop.xlane.xlu1 %714 }
 0x380   :  { %2412 = vpow2.f32 %v551_v26  ;;  %v716_v28 = vsub.f32 %v712_v16, %v715_v27  ;;  %v2084_v26 = vld [vmem:[%s2966_s10 + $0x10] sm:$0xff] }
 0x382   :  { %v717_v29 = vmul.f32 1.442695, %v716_v28 }
 0x384   :  { %2414 = vpow2.f32 %v717_v29 }
 0x38d   :  { %v2413_v30 = vpop.eup %2412 }
 0x38e   :  { %v553_v33 = vsel %vm546_vm7, %v2413_v30, 0.0 }
 0x38f   :  { %554 = vadd.xlane.f32.xlu0 %v553_v33 }
 0x391   :  { %v2415_v34 = vpop.eup %2414 }
 0x392   :  { %v719_v35 = vsel %vm546_vm7, %v2415_v34, 0.0 }
 0x393   :  { %720 = vadd.xlane.f32.xlu1 %v719_v35 }
 0x418   :  { %v555_v36 = vpop.xlane.xlu0 %554 }
 0x419   :  { %2416 = vrcp.f32 %v555_v36 }
 0x41c   :  { %v721_v37 = vpop.xlane.xlu1 %720 }
 0x41d   :  { %2418 = vrcp.f32 %v721_v37  ;;  %v2090_v37 = vld [vmem:[%s2967_s11] ss:$0 sm:$0xff] }
 0x426   :  { %v2417_v38 = vpop.eup %2416 }
 0x427   :  { %v557_v39 = vmul.f32 %v2417_v38, %v2413_v30 }
 0x429   :  { %2276 = vmatmul.mubr.msk.f32.vlgmr.msra.gmra.mxu0 %vm546_vm7, %v557_v39 }
 0x42a   :  { %v2419_v41 = vpop.eup %2418  ;;  %2284 = vmatpush3.msra.mxu0 %v2721_v55  ;;  %2285 = vmatprep.mubr.msk.f32.mxu0 %vm2460_vm5, %v2459_v18 }
 0x42b   :  { %2299 = vmatprep.subr.mxu0 %v2065_v40  ;;  %v723_v42 = vmul.f32 %v2419_v41, %v2415_v34 }
 0x42d   :  { %2286 = vmatmul.mubr.msk.f32.vlgmr.msra.gmra.mxu0 %vm546_vm7, %v723_v42 }
 0x42e   :  { %2300 = vmatpush3.msra.mxu0 %v2065_v40  ;;  %2307 = vmatprep.mubr.msk.f32.mxu0 %vm209_vm4, %v2654_v31 }
 0x42f   :  { %2301 = vmatprep.subr.mxu0 %v2064_v43 }
 0x430   :  { %2302 = vmatpush3.msra.mxu0 %v2064_v43 }
 0x431   :  { %2303 = vmatprep.subr.mxu0 %v2063_v44 }
 0x432   :  { %2304 = vmatpush3.msra.mxu0 %v2063_v44 }
 0x433   :  { %2305 = vmatprep.subr.mxu0 %v2062_v45 }
 0x434   :  { %2306 = vmatpush3.msra.mxu0 %v2062_v45 }
 0x435   :  { %2308 = vmatmul.mubr.msk.f32.vlgmr.msra.gmra.mxu0 %vm209_vm4, %v2656_v32  ;;  %2321 = vmatprep.subr.mxu0 %v2459_v18 }
 0x436   :  { %2323 = vmatprep.mubr.msk.f32.mxu0 %vm2460_vm5, %v2459_v18 }
 0x4e9   :  { %v2793_v46 = vpop.f32.mrf.mxu0 }
 0x4eb   :  { %v2277_v47 = vpop.f32.mrf.mxu0 }
 0x4ed   :  { %v2795_v48 = vpop.f32.mrf.mxu0 }
 0x4ef   :  { %v2287_v49 = vpop.f32.mrf.mxu0 }
 0x4f5   :  { %v2309_v51 = vpop.f32.mrf.mxu0 }
 0x4f6   :  { %v972_v53 = vadd.f32 %v2309_v51, %v2067_v50 }
 0x4f7   :  { %v966_v54 = vpop.f32.mrf.mxu0 }
 0x4f8   :  { %v967_v55 = vadd.f32 %v2067_v50, %v966_v54  ;;  %2332 = vmatpush3.xpose.msk.msra.mxu1 %vm463_vm6, %v972_v53 }
 0x4fa   :  { %2322 = vmatpush3.xpose.msk.msra.mxu0 %vm463_vm6, %v967_v55  ;;  %v1610_v55 = vld [vmem:[%s2970_s14 + $0x10] sm:$0xff] }
 0x4fb   :  { %2334 = vmatmul.mubr.msk.f32.vlgmr.msra.gmra.mxu1 %vm463_vm6, %v884_v56  ;;  %2326 = vmatprep.subr.mxu0 %v2459_v18  ;;  %v1609_v56 = vld [vmem:[%s2970_s14 + $0x8] sm:$0xff] }
 0x4fd   :  { %2324 = vmatmul.mubr.msk.f32.vlgmr.msra.gmra.mxu0 %vm463_vm6, %v879_v58  ;;  %v1709_v58 = vld [vmem:[%s2972_s16 + $0x38] sm:$0xff] }
 0x4fe   :  { %2327 = vmatpush3.msra.mxu0 %v1055_v59  ;;  %2328 = vmatprep.mubr.msk.f32.mxu0 %vm2460_vm5, %v2459_v18  ;;  %v1708_v59 = vld [vmem:[%s2972_s16 + $0x30] sm:$0xff] }
 0x4ff   :  { %2336 = vmatprep.subr.mxu0 %v2459_v18 }
 0x5bb   :  { %v1297_v60 = vpop.f32.mrf.mxu1 }
 0x5bc   :  { %v1301_v63 = vmul.f32 0.25, %v1297_v60  ;;  %v1707_v60 = vld [vmem:[%s2972_s16 + $0x28] sm:$0xff] }
 0x5bd   :  { %v1135_v61 = vpop.f32.mrf.mxu0  ;;  %v2335_v62 = vpop.f32.mrf.mxu1 }
 0x5be   :  { %v1139_v0 = vmul.f32 0.25, %v1135_v61  ;;  %v1302_v4 = vadd.f32 %v1301_v63, %v2756_v12  ;;  %v1706_v61 = vld [vmem:[%s2972_s16 + $0x20] sm:$0xff] }
 0x5bf   :  { %v2325_v1 = vpop.f32.mrf.mxu0 }
 0x5c0   :  { %v1140_v2 = vadd.f32 %v1139_v0, %v2754_v7  ;;  %v1303_v5 = vsel %vm546_vm7, %v1302_v4, -inf }
 0x5c2   :  { %v1141_v3 = vsel %vm546_vm7, %v1140_v2, -inf }
 0x5c3   :  { %1142 = vmax.xlane.f32.xlu1 %v1141_v3 }
 0x5c7   :  { %1304 = vmax.xlane.f32.xlu1 %v1303_v5  ;;  %v2091_v5 = vld [vmem:[%s2968_s12] ss:$0 sm:$0xff] }
 0x64c   :  { %v1143_v6 = vpop.xlane.xlu1 %1142 }
 0x64d   :  { %v1144_v8 = vsub.f32 %v1140_v2, %v1143_v6 }
 0x64f   :  { %v1145_v9 = vmul.f32 1.442695, %v1144_v8  ;;  %v2092_v8 = vld [vmem:[%s2969_s13] ss:$0 sm:$0xff] }
 0x650   :  { %v1305_v10 = vpop.xlane.xlu1 %1304 }
 0x651   :  { %2420 = vpow2.f32 %v1145_v9  ;;  %v1306_v11 = vsub.f32 %v1302_v4, %v1305_v10 }
 0x653   :  { %v1307_v13 = vmul.f32 1.442695, %v1306_v11 }
 0x655   :  { %2422 = vpow2.f32 %v1307_v13 }
 0x65e   :  { %v2421_v14 = vpop.eup %2420 }
 0x65f   :  { %v1147_v15 = vsel %vm546_vm7, %v2421_v14, 0.0 }
 0x660   :  { %1148 = vadd.xlane.f32.xlu1 %v1147_v15 }
 0x662   :  { %v2423_v7 = vpop.eup %2422 }
 0x663   :  { %v1309_v16 = vsel %vm546_vm7, %v2423_v7, 0.0 }
 0x664   :  { %1310 = vadd.xlane.f32.xlu1 %v1309_v16  ;;  %v1704_v16 = vld [vmem:[%s2972_s16 + $0x10] sm:$0xff] }
 0x6e9   :  { %v1149_v12 = vpop.xlane.xlu1 %1148 }
 0x6ea   :  { %2424 = vrcp.f32 %v1149_v12  ;;  %v1703_v12 = vld [vmem:[%s2972_s16 + $0x8] sm:$0xff] }
 0x6ed   :  { %v1311_v17 = vpop.xlane.xlu1 %1310 }
 0x6ee   :  { %2426 = vrcp.f32 %v1311_v17  ;;  %v1702_v17 = vld [vmem:[%s2972_s16] sm:$0xff] }
 0x6f7   :  { %v2425_v19 = vpop.eup %2424 }
 0x6f8   :  { %v1151_v20 = vmul.f32 %v2425_v19, %v2421_v14  ;;  %v2093_v19 = vld [vmem:[%s2971_s15] ss:$0 sm:$0xff] }
 0x6fa   :  { %2329 = vmatmul.mubr.msk.f32.vlgmr.msra.gmra.mxu0 %vm546_vm7, %v1151_v20 }
 0x6fb   :  { %v2427_v22 = vpop.eup %2426  ;;  %2337 = vmatpush3.msra.mxu0 %v2765_v23  ;;  %2338 = vmatprep.mubr.msk.f32.mxu0 %vm2460_vm5, %v2459_v18  ;;  %v2085_v23 = vld [vmem:[%s2966_s10 + $0x18] sm:$0xff] }
 0x6fc   :  { %v1313_v24 = vmul.f32 %v2427_v22, %v2423_v7  ;;  %2348 = vmatprep.subr.mxu0 %v798_v21  ;;  %2341 = vmatprep.subr.mxu1 %v2085_v23  ;;  %v1705_v7 = vld [vmem:[%s2972_s16 + $0x18] sm:$0xff] }
 0x6fd   :  { %2342 = vmatpush3.msra.mxu1 %v2085_v23 }
 0x6fe   :  { %2339 = vmatmul.mubr.msk.f32.vlgmr.msra.gmra.mxu0 %vm546_vm7, %v1313_v24  ;;  %2343 = vmatprep.subr.mxu1 %v2084_v26 }
 0x6ff   :  { %2349 = vmatpush3.msra.mxu0 %v798_v21  ;;  %2352 = vmatprep.mubr.msk.f32.mxu0 %vm463_vm6, %v2793_v46 }
 0x700   :  { %2350 = vmatprep.subr.mxu0 %v797_v25  ;;  %2344 = vmatpush3.msra.mxu1 %v2084_v26  ;;  %v2096_v26 = vld [vmem:[%s2973_s17] ss:$0 sm:$0xff] }
 0x701   :  { %2351 = vmatpush3.msra.mxu0 %v797_v25 }
 0x702   :  { %2353 = vmatmul.mubr.msk.f32.vlgmr.msra.gmra.mxu0 %vm463_vm6, %v2795_v48  ;;  %2366 = vmatprep.subr.mxu0 %v1709_v58 }
 0x703   :  { %2367 = vmatpush3.msra.mxu0 %v1709_v58 }
 0x704   :  { %2368 = vmatprep.subr.mxu0 %v1708_v59 }
 0x705   :  { %2369 = vmatpush3.msra.mxu0 %v1708_v59  ;;  %v2100_v59 = vld [vmem:[%s3007_s3] ss:$0 sm:$0xff] }
 0x706   :  { %2370 = vmatprep.subr.mxu0 %v1707_v60 }
 0x707   :  { %2371 = vmatpush3.msra.mxu0 %v1707_v60 }
 0x708   :  { %2372 = vmatprep.subr.mxu0 %v1706_v61 }
 0x709   :  { %2373 = vmatpush3.msra.mxu0 %v1706_v61 }
 0x70a   :  { %2374 = vmatprep.subr.mxu0 %v1705_v7 }
 0x70b   :  { %2375 = vmatpush3.msra.mxu0 %v1705_v7 }
 0x70c   :  { %2376 = vmatprep.subr.mxu0 %v1704_v16 }
 0x70d   :  { %2377 = vmatpush3.msra.mxu0 %v1704_v16 }
 0x70e   :  { %2378 = vmatprep.subr.mxu0 %v1703_v12 }
 0x70f   :  { %2379 = vmatpush3.msra.mxu0 %v1703_v12 }
 0x710   :  { %2380 = vmatprep.subr.mxu0 %v1702_v17 }
 0x711   :  { %2381 = vmatpush3.msra.mxu0 %v1702_v17 }
 0x7ba   :  { %v1221_v27 = vpop.f32.mrf.mxu0 }
 0x7bb   :  { %2345 = vmatprep.mubr.msk.f32.mxu1 %vm463_vm6, %v1221_v27 }
 0x7bc   :  { %v2330_v28 = vpop.f32.mrf.mxu0 }
 0x7be   :  { %v1383_v29 = vpop.f32.mrf.mxu0 }
 0x7bf   :  { %2346 = vmatmul.mubr.msk.f32.vlgmr.msra.gmra.mxu1 %vm463_vm6, %v1383_v29 }
 0x7c0   :  { %v2340_v30 = vpop.f32.mrf.mxu0 }
 0x7c2   :  { %v2354_v33 = vpop.f32.mrf.mxu0 }
 0x7c4   :  { %v1543_v36 = vpop.f32.mrf.mxu0 }
 0x87f   :  { %v2347_v34 = vpop.f32.mrf.mxu1 }
 0x880   :  { %v1549_v35 = vadd.f32 %v2354_v33, %v2347_v34 }
 0x881   :  { %v1462_v38 = vpop.f32.mrf.mxu1 }
 0x882   :  { %v1544_v39 = vadd.f32 %v1543_v36, %v1462_v38  ;;  %v1560_v40 = vadd.f32 %v2090_v37, %v1549_v35 }
 0x884   :  { %v1559_v41 = vadd.f32 %v2090_v37, %v1544_v39  ;;  %v1562_v44 = vadd.f32 %v1560_v40, %v2656_v32  ;;  %v1611_v32 = vld [vmem:[%s2970_s14 + $0x18] sm:$0xff] }
 0x885   :  { %2355 = vmatprep.subr.mxu1 %v1611_v32 }
 0x886   :  { %v1561_v42 = vadd.f32 %v1559_v41, %v2654_v31  ;;  %v1568_v45 = vsel %vm209_vm4, %v1562_v44, 0.0  ;;  %2356 = vmatpush3.msra.mxu1 %v1611_v32 }
 0x887   :  { %2357 = vmatprep.subr.mxu1 %v1610_v55 }
 0x888   :  { %v1565_v43 = vsel %vm209_vm4, %v1561_v42, 0.0  ;;  %2358 = vmatpush3.msra.mxu1 %v1610_v55 }
 0x889   :  { %1566 = vadd.xlane.f32.xlu1 %v1565_v43  ;;  %2359 = vmatprep.subr.mxu1 %v1609_v56 }
 0x88a   :  { %2360 = vmatpush3.msra.mxu1 %v1609_v56  ;;  %v2099_v56 = vld [vmem:[%s2974_s18] ss:$0 sm:$0xff] }
 0x88b   :  { %2361 = vmatprep.subr.mxu1 %v1608_v57 }
 0x88c   :  { %2362 = vmatpush3.msra.mxu1 %v1608_v57 }
 0x88d   :  { %1569 = vadd.xlane.f32.xlu1 %v1568_v45  ;;  %2385 = vmatprep.subr.mxu1 %v2459_v18 }
 0x912   :  { %v1567_v46 = vpop.xlane.xlu1 %1566 }
 0x913   :  { %v1572_v47 = vmul.f32 0.03125, %v1567_v46 }
 0x915   :  { %v1574_v48 = vsub.f32 %v1561_v42, %v1572_v47  ;;  %v1853_v47 = vld [vmem:[%s2976_s20 + $0x18] sm:$0xff] }
 0x916   :  { %v1570_v49 = vpop.xlane.xlu1 %1569 }
 0x917   :  { %v1573_v50 = vmul.f32 0.03125, %v1570_v49  ;;  %v1576_v51 = vmul.f32 %v1574_v48, %v1574_v48  ;;  %v1851_v49 = vld [vmem:[%s2976_s20 + $0x8] sm:$0xff] }
 0x919   :  { %v1575_v52 = vsub.f32 %v1562_v44, %v1573_v50  ;;  %v1578_v53 = vsel %vm209_vm4, %v1576_v51, 0.0  ;;  %v1850_v50 = vld [vmem:[%s2976_s20] sm:$0xff] }
 0x91a   :  { %1579 = vadd.xlane.f32.xlu1 %v1578_v53 }
 0x91b   :  { %v1577_v54 = vmul.f32 %v1575_v52, %v1575_v52 }
 0x91d   :  { %v1581_v31 = vsel %vm209_vm4, %v1577_v54, 0.0 }
 0x91e   :  { %1582 = vadd.xlane.f32.xlu0 %v1581_v31 }
 0x9a3   :  { %v1580_v62 = vpop.xlane.xlu1 %1579 }
 0x9a4   :  { %v1584_v63 = vmul.f32 0.03125, %v1580_v62 }
 0x9a6   :  { %v1586_v0 = vadd.f32 1e-05, %v1584_v63 }
 0x9a7   :  { %v1583_v1 = vpop.xlane.xlu0 %1582 }
 0x9a8   :  { %2428 = vrsqrt.f32 %v1586_v0  ;;  %v1585_v2 = vmul.f32 0.03125, %v1583_v1 }
 0x9aa   :  { %v1587_v3 = vadd.f32 1e-05, %v1585_v2  ;;  %v1938_v2 = vld [vmem:[%s2978_s22 + $0x18] sm:$0xff] }
 0x9ac   :  { %2430 = vrsqrt.f32 %v1587_v3 }
 0x9b5   :  { %v2429_v4 = vpop.eup %2428 }
 0x9b6   :  { %v1590_v6 = vmul.f32 %v2429_v4, %v1574_v48  ;;  %v1852_v48 = vld [vmem:[%s2976_s20 + $0x10] sm:$0xff] }
 0x9b7   :  { %v1937_v4 = vld [vmem:[%s2978_s22 + $0x10] sm:$0xff] }
 0x9b8   :  { %v1598_v9 = vmul.f32 %v2091_v5, %v1590_v6  ;;  %v1935_v6 = vld [vmem:[%s2978_s22] sm:$0xff] }
 0x9b9   :  { %v2431_v10 = vpop.eup %2430 }
 0x9ba   :  { %v1591_v11 = vmul.f32 %v2431_v10, %v1575_v52  ;;  %v1606_v13 = vadd.f32 %v2092_v8, %v1598_v9 }
 0x9bc   :  { %v1599_v14 = vmul.f32 %v2091_v5, %v1591_v11  ;;  %2363 = vmatprep.mubr.msk.f32.mxu1 %vm209_vm4, %v1606_v13  ;;  %v1936_v5 = vld [vmem:[%s2978_s22 + $0x8] sm:$0xff]  ;;  %s2436_s22 = scalar_lea.vmem %s2027_s2, 32 }
 0x9bd   :  { %p2437_p0 = scmp.ne.s32.totalorder %s2027_s2, %s2436_s22  ;;  %p2442_p2 = scmp.lt.s32.totalorder %s2436_s22, %s2436_s22 }
 0x9be   :  { %v1607_v15 = vadd.f32 %v2092_v8, %v1599_v14  ;;  %v2101_v8 = vld [vmem:[%s2977_s21] ss:$0 sm:$0xff] }
 0x9bf   :  { %v2103_v14 = vld [vmem:[%s2979_s23] ss:$0 sm:$0xff]  ;;  %p2443_p3 = por %p2442_p2, %p2441_p1 }
 0x9c0   :  { %2364 = vmatmul.mubr.msk.f32.vlgmr.msra.gmra.mxu1 %vm209_vm4, %v1607_v15 }
 0x9c1   :  { %2393 = vmatprep.mubr.msk.f32.mxu1 %vm2460_vm5, %v2459_v18  ;;  %2386 = vmatpush3.msra.mxu1 %v1853_v47  ;;  %p2444_p4 = pnand %p2443_p3, %p2437_p0 }
 0x9c2   :  { %2387 = vmatprep.subr.mxu1 %v2459_v18 }
 0x9c3   :  { %2388 = vmatpush3.msra.mxu1 %v1852_v48 }
 0x9c4   :  { %2389 = vmatprep.subr.mxu1 %v2459_v18 }
 0x9c5   :  { %2390 = vmatpush3.msra.mxu1 %v1851_v49 }
 0x9c6   :  { %2391 = vmatprep.subr.mxu1 %v2459_v18 }
 0x9c7   :  { %2392 = vmatpush3.msra.mxu1 %v1850_v50 }
 0x9c8   :  { %2396 = vmatprep.subr.mxu1 %v2459_v18 }
 0xa80   :  { %v2365_v20 = vpop.f32.mrf.mxu1 }
 0xa81   :  { %v1697_v21 = vadd.f32 %v2365_v20, %v2093_v19 }
 0xa82   :  { %v1691_v22 = vpop.f32.mrf.mxu1 }
 0xa83   :  { %v1692_v24 = vadd.f32 %v2093_v19, %v1691_v22  ;;  %v1701_v23 = vmax.f32 %v1697_v21, 0.0 }
 0xa85   :  { %v1700_v25 = vmax.f32 %v1692_v24, 0.0 }
 0xa87   :  { %2382 = vmatprep.mubr.msk.f32.mxu0 %vm1717_vm8, %v1700_v25 }
 0xa88   :  { %2383 = vmatmul.mubr.msk.f32.vlgmr.msra.gmra.mxu0 %vm1717_vm8, %v1701_v23 }
 0xb48   :  { %v2384_v27 = vpop.f32.mrf.mxu0 }
 0xb49   :  { %v1796_v28 = vadd.f32 %v2384_v27, %v2096_v26 }
 0xb4a   :  { %v1790_v29 = vpop.f32.mrf.mxu0 }
 0xb4b   :  { %v1791_v30 = vadd.f32 %v2096_v26, %v1790_v29  ;;  %v1800_v33 = vadd.f32 %v1796_v28, %v1607_v15 }
 0xb4d   :  { %v1806_v34 = vsel %vm209_vm4, %v1800_v33, 0.0  ;;  %v1799_v35 = vadd.f32 %v1791_v30, %v1606_v13 }
 0xb4e   :  { %1807 = vadd.xlane.f32.xlu1 %v1806_v34 }
 0xb4f   :  { %v1803_v36 = vsel %vm209_vm4, %v1799_v35, 0.0 }
 0xb50   :  { %1804 = vadd.xlane.f32.xlu0 %v1803_v36 }
 0xbd7   :  { %v1808_v37 = vpop.xlane.xlu1 %1807 }
 0xbd8   :  { %v1810_v38 = vmul.f32 0.03125, %v1808_v37 }
 0xbd9   :  { %v1805_v39 = vpop.xlane.xlu0 %1804 }
 0xbda   :  { %v1812_v40 = vsub.f32 %v1800_v33, %v1810_v38  ;;  %v1809_v41 = vmul.f32 0.03125, %v1805_v39 }
 0xbdc   :  { %v1811_v42 = vsub.f32 %v1799_v35, %v1809_v41  ;;  %v1814_v43 = vmul.f32 %v1812_v40, %v1812_v40 }
 0xbde   :  { %v1818_v44 = vsel %vm209_vm4, %v1814_v43, 0.0  ;;  %v1813_v45 = vmul.f32 %v1811_v42, %v1811_v42 }
 0xbdf   :  { %1819 = vadd.xlane.f32.xlu1 %v1818_v44 }
 0xbe0   :  { %v1815_v46 = vsel %vm209_vm4, %v1813_v45, 0.0 }
 0xbe1   :  { %1816 = vadd.xlane.f32.xlu0 %v1815_v46 }
 0xc68   :  { %v1820_v51 = vpop.xlane.xlu1 %1819 }
 0xc69   :  { %v1822_v52 = vmul.f32 0.03125, %v1820_v51 }
 0xc6a   :  { %v1817_v53 = vpop.xlane.xlu0 %1816 }
 0xc6b   :  { %v1824_v54 = vadd.f32 1e-05, %v1822_v52  ;;  %v1821_v31 = vmul.f32 0.03125, %v1817_v53 }
 0xc6d   :  { %2432 = vrsqrt.f32 %v1824_v54  ;;  %v1823_v32 = vadd.f32 1e-05, %v1821_v31 }
 0xc6f   :  { %2434 = vrsqrt.f32 %v1823_v32 }
 0xc7a   :  { %v2433_v55 = vpop.eup %2432 }
 0xc7b   :  { %v1828_v57 = vmul.f32 %v2433_v55, %v1812_v40 }
 0xc7c   :  { %v2435_v58 = vpop.eup %2434 }
 0xc7d   :  { %v1827_v60 = vmul.f32 %v2435_v58, %v1811_v42  ;;  %v1836_v61 = vmul.f32 %v2099_v56, %v1828_v57 }
 0xc7f   :  { %v1835_v62 = vmul.f32 %v2099_v56, %v1827_v60  ;;  %v1844_v63 = vadd.f32 %v2100_v59, %v1836_v61 }
 0xc81   :  { %v1843_v0 = vadd.f32 %v2100_v59, %v1835_v62  ;;  %v1846_v1 = vrot.slane %v1844_v63, 7 }
 0xc83   :  { %v1849_v3 = vsel %vm1848_vm9, %v1843_v0, %v1846_v1 }
 0xc84   :  { %2394 = vmatmul.mubr.msk.f32.vlgmr.msra.gmra.mxu1 %vm209_vm4, %v1849_v3 }
 0xc85   :  { %2397 = vmatpush3.msra.mxu1 %v1938_v2  ;;  %2404 = vmatprep.mubr.msk.f32.mxu1 %vm2460_vm5, %v2459_v18 }
 0xc86   :  { %2398 = vmatprep.subr.mxu1 %v2459_v18 }
 0xc87   :  { %2399 = vmatpush3.msra.mxu1 %v1937_v4 }
 0xc88   :  { %2400 = vmatprep.subr.mxu1 %v2459_v18 }
 0xc89   :  { %2401 = vmatpush3.msra.mxu1 %v1936_v5 }
 0xc8a   :  { %2402 = vmatprep.subr.mxu1 %v2459_v18 }
 0xc8b   :  { %2403 = vmatpush3.msra.mxu1 %v1935_v6 }
 0xd44   :  { %v1930_v9 = vpop.f32.mrf.mxu1 }
 0xd45   :  { %v1931_v10 = vadd.f32 %v2101_v8, %v1930_v9 }
 0xd46   :  { %v2395_v11 = vpop.f32.mrf.mxu1 }
 0xd47   :  { %v1934_v13 = vmax.f32 %v1931_v10, 0.0 }
 0xd49   :  { %2405 = vmatmul.mubr.msk.f32.vlgmr.msra.gmra.mxu1 %vm209_vm4, %v1934_v13 }
 0xe09   :  { %v2015_v15 = vpop.f32.mrf.mxu1 }
 0xe0a   :  { %v2016_v7 = vadd.f32 %v2103_v14, %v2015_v15 }
 0xe0b   :  { %v2406_v18 = vpop.f32.mrf.mxu1 }
 0xe0c   :  { %2019 = vst [vmem:[#allocation2] sm:$0x3] %v2016_v7 }
 0xe0d   :  { %2447 = shalt.err (!%p2444_p4)
}
 0xe0e   :  { %2029 = dma.vmem_to_hbm [thread:$0]  %s2027_s2, 32, %s2980_s24, [#allocation3]  }
 0xe0f   :  { %2456 = dma.done.wait [#allocation3], 32  }
 0xe10   :  { %2457 = vsyncadd [#allocation3], 4294967264 }
 0xe11   :  { %2033 = vsyncpa [#allocation3], 1 }

</bundles_post_ra>
